<compile_context>
chip_gen: v6e
topology: v6e:2x2x1
jax: 0.10.0
libtpu: 0.0.40
codegen_flags: <defaults>
</compile_context>

<pallas_src>
import functools

import jax
import jax.numpy as jnp
from jax.experimental import pallas as pl
from jax.experimental.pallas import tpu as pltpu

# f32 preserves PyTorch forward semantics; set to jnp.bfloat16 on v6e/v7x for ~2x MXU
# throughput and half the operand HBM/VMEM traffic (accumulation stays f32).
MATMUL_DTYPE = jnp.float32


# ----------------------------------------------------------------------- helpers
def _round_up(x, m):
    return (x + m - 1) // m * m


def _pick_row_tile(rows, cap=512):
    """Largest power-of-two sublane tile (>=8) dividing `rows`, else full extent."""
    if rows % 8 != 0:
        return rows
    t = cap
    while t >= 8:
        if rows % t == 0:
            return t
        t //= 2
    return rows


def _pick_lane_tile(m, cap=2048):
    """Largest power-of-two lane tile (multiple of 128) dividing `m`, else full."""
    if m % 128 != 0:
        return m
    t = cap
    while t >= 128:
        if m % t == 0:
            return t
        t //= 2
    return m


# --------------------------------------------------------- gridded matmul + epilogue
def _mm_epilogue_kernel(a_ref, b_ref, bias_ref, o_ref, acc_ref, *, act, slope):
    k = pl.program_id(2)

    @pl.when(k == 0)
    def _():
        acc_ref[...] = jnp.zeros_like(acc_ref)

    acc_ref[...] += jnp.dot(a_ref[...], b_ref[...],
                            preferred_element_type=jnp.float32)

    @pl.when(k == pl.num_programs(2) - 1)
    def _():
        y = acc_ref[...] + bias_ref[...].astype(jnp.float32)
        if act == 'relu':
            y = jnp.maximum(y, 0.0)
        elif act == 'leaky_relu':
            y = jnp.where(y >= 0, y, slope * y)
        o_ref[...] = y.astype(o_ref.dtype)


def matmul_epilogue(a, b, bias, *, bias_axis, act='none', slope=0.0):
    """act(a @ b + bias).  a:(M,K), b:(K,N).  bias broadcasts along rows
    (bias_axis='row', shape (M,)) or columns (bias_axis='col', shape (N,))."""
    M, K = a.shape
    K2, N = b.shape
    assert K == K2

    # 128/256-aligned tiles when the dims are big enough, else a single padded block.
    tm = 128 if M >= 128 else _round_up(M, 8)
    tn = 256 if N >= 256 else _round_up(N, 128)
    tk = 256 if K >= 256 else _round_up(K, 8)
    Mp, Np, Kp = _round_up(M, tm), _round_up(N, tn), _round_up(K, tk)

    a = a.astype(MATMUL_DTYPE)
    b = b.astype(MATMUL_DTYPE)
    if (Mp, Kp) != (M, K):
        a = jnp.pad(a, ((0, Mp - M), (0, Kp - K)))
    if (Kp, Np) != (K, N):
        b = jnp.pad(b, ((0, Kp - K), (0, Np - N)))

    if bias_axis == 'row':
        bias2 = bias.reshape(M, 1).astype(jnp.float32)
        if Mp != M:
            bias2 = jnp.pad(bias2, ((0, Mp - M), (0, 0)))
        bias_spec = pl.BlockSpec((tm, 1), lambda i, j, k: (i, 0))
    else:
        bias2 = bias.reshape(1, N).astype(jnp.float32)
        if Np != N:
            bias2 = jnp.pad(bias2, ((0, 0), (0, Np - N)))
        bias_spec = pl.BlockSpec((1, tn), lambda i, j, k: (0, j))

    grid = (Mp // tm, Np // tn, Kp // tk)
    out = pl.pallas_call(
        functools.partial(_mm_epilogue_kernel, act=act, slope=slope),
        out_shape=jax.ShapeDtypeStruct((Mp, Np), jnp.float32),
        grid_spec=pltpu.PrefetchScalarGridSpec(
            num_scalar_prefetch=0,
            grid=grid,
            in_specs=[pl.BlockSpec((tm, tk), lambda i, j, k: (i, k)),
                      pl.BlockSpec((tk, tn), lambda i, j, k: (k, j)),
                      bias_spec],
            out_specs=pl.BlockSpec((tm, tn), lambda i, j, k: (i, j)),
            scratch_shapes=[pltpu.VMEM((tm, tn), jnp.float32)]),
        compiler_params=pltpu.CompilerParams(
            dimension_semantics=("parallel", "parallel", "arbitrary"),
            vmem_limit_bytes=32 * 1024 * 1024),
    )(a, b, bias2)
    if (Mp, Np) != (M, N):
        out = out[:M, :N]
    return out


# ------------------------------------------------------------------------ conv layer
def conv2d_cnhw(x, wmat, bias, *, KH, KW, stride, pad, act='none', slope=0.0):
    """PyTorch-semantics Conv2d on (C, N, H, W) layout.
    wmat: (OC, C*KH*KW) in PyTorch (c, kh, kw) contraction order.  Output (OC, N, OH, OW)
    comes straight out of the lane-dense matmul -- no transpose needed."""
    C, N, H, W = x.shape
    OC = wmat.shape[0]
    OH = (H + 2 * pad - KH) // stride + 1
    OW = (W + 2 * pad - KW) // stride + 1
    xp = jnp.pad(x, ((0, 0), (0, 0), (pad, pad), (pad, pad)))
    # TODO(synk): im2col is still host-side XLA glue (materializes the input KH*KW
    # times in HBM); a fully fused Pallas conv would form patches in VMEM instead.
    cols = []
    for i in range(KH):
        for j in range(KW):
            cols.append(xp[:, :, i:i + stride * OH:stride, j:j + stride * OW:stride])
    patches = jnp.stack(cols, axis=1)                      # (C, KH*KW, N, OH, OW)
    bmat = patches.reshape(C * KH * KW, N * OH * OW)       # (K, M) -- M on lanes
    out = matmul_epilogue(wmat, bmat, bias, bias_axis='row', act=act, slope=slope)
    return out.reshape(OC, N, OH, OW)


# ----------------------------------------------------------------- batch norm (train)
def _bn_stats_kernel(x_ref, sum_ref, sq_ref):
    @pl.when(pl.program_id(0) == 0)
    def _():
        sum_ref[...] = jnp.zeros_like(sum_ref)
        sq_ref[...] = jnp.zeros_like(sq_ref)

    x = x_ref[...]
    sum_ref[...] += jnp.sum(x, axis=1, keepdims=True)
    sq_ref[...] += jnp.sum(x * x, axis=1, keepdims=True)


def _bn_apply_kernel(x_ref, sum_ref, sq_ref, gamma_ref, beta_ref, o_ref, *,
                     count, eps, act, slope):
    mean = sum_ref[...] * (1.0 / count)
    var = sq_ref[...] * (1.0 / count) - mean * mean        # biased batch variance
    scale = gamma_ref[...] * jax.lax.rsqrt(var + eps)
    shift = beta_ref[...] - mean * scale
    y = x_ref[...] * scale + shift
    if act == 'relu':
        y = jnp.maximum(y, 0.0)
    elif act == 'leaky_relu':
        y = jnp.where(y >= 0, y, slope * y)
    o_ref[...] = y


def batch_norm_train(x_cm, gamma, beta, *, eps=1e-5, act='none', slope=0.0):
    """Training-mode BatchNorm2d on (C, M=N*H*W) layout, tiled over the reduction
    axis, with a following activation fused into the normalize pass.
    (running_mean/running_var tracking is not needed for the forward output.)"""
    C, M = x_cm.shape
    tn = _pick_lane_tile(M)
    grid = (M // tn,)
    g2 = gamma.reshape(C, 1).astype(jnp.float32)
    b2 = beta.reshape(C, 1).astype(jnp.float32)
    stat_spec = pl.BlockSpec((C, 1), lambda j: (0, 0))
    x_spec = pl.BlockSpec((C, tn), lambda j: (0, j))

    s, sq = pl.pallas_call(
        _bn_stats_kernel,
        out_shape=(jax.ShapeDtypeStruct((C, 1), jnp.float32),
                   jax.ShapeDtypeStruct((C, 1), jnp.float32)),
        grid_spec=pltpu.PrefetchScalarGridSpec(
            num_scalar_prefetch=0, grid=grid,
            in_specs=[x_spec],
            out_specs=(stat_spec, stat_spec)),
        compiler_params=pltpu.CompilerParams(
            dimension_semantics=("arbitrary",)),
    )(x_cm)

    return pl.pallas_call(
        functools.partial(_bn_apply_kernel, count=float(M), eps=eps,
                          act=act, slope=slope),
        out_shape=jax.ShapeDtypeStruct((C, M), jnp.float32),
        grid_spec=pltpu.PrefetchScalarGridSpec(
            num_scalar_prefetch=0, grid=grid,
            in_specs=[x_spec, stat_spec, stat_spec, stat_spec, stat_spec],
            out_specs=x_spec),
        compiler_params=pltpu.CompilerParams(
            dimension_semantics=("parallel",)),
    )(x_cm, s, sq, g2, b2)


# ------------------------------------------------------------------------ max pooling
def _pool_kernel(x_ref, o_ref, *, W, OW):
    # x block: (rows, 2*W) -- lanes [0:W) = top row of the 2x2 window, [W:2W) = bottom.
    even = x_ref[:, pl.ds(0, W, stride=2)]   # [top even cols | bottom even cols]
    odd = x_ref[:, pl.ds(1, W, stride=2)]    # [top odd  cols | bottom odd  cols]
    m = jnp.maximum(even, odd)               # horizontal max, per row half
    o_ref[...] = jnp.maximum(m[:, :OW], m[:, OW:])   # vertical max


def maxpool2x2_cnhw(x):
    """MaxPool2d(kernel=2, stride=2, padding=0) on (C, N, H, W); the 2x2 reduction
    runs entirely in-kernel on a zero-copy (C*N*OH, 2*W) view (no 4-view HBM stack)."""
    C, N, H, W = x.shape
    assert H % 2 == 0 and W % 2 == 0
    OH, OW = H // 2, W // 2
    R = C * N * OH
    x2 = x.reshape(R, 2 * W)                 # pure reshape (zero-copy)
    tr = _pick_row_tile(R)
    out = pl.pallas_call(
        functools.partial(_pool_kernel, W=W, OW=OW),
        out_shape=jax.ShapeDtypeStruct((R, OW), x.dtype),
        grid_spec=pltpu.PrefetchScalarGridSpec(
            num_scalar_prefetch=0, grid=(R // tr,),
            in_specs=[pl.BlockSpec((tr, 2 * W), lambda i: (i, 0))],
            out_specs=pl.BlockSpec((tr, OW), lambda i: (i, 0))),
        compiler_params=pltpu.CompilerParams(
            dimension_semantics=("parallel",)),
    )(x2)
    return out.reshape(C, N, OH, OW)


# --------------------------------------------------- standalone activations (fallback)
def _act_kernel(x_ref, o_ref, *, act, slope):
    x = x_ref[...]
    if act == 'relu':
        y = jnp.maximum(x, 0.0)
    else:
        y = jnp.where(x >= 0, x, slope * x)
    o_ref[...] = y


def elementwise_act(x, act, slope=0.0):
    """Gridded, lane-dense elementwise activation (only used when it could not be
    fused into a preceding conv / fc / batch_norm epilogue)."""
    shp = x.shape
    n = x.size
    L = 0
    for cand in (2048, 1024, 512, 256, 128):
        if n % cand == 0:
            L = cand
            break
    if L == 0:
        n_pad = _round_up(n, 128)
        xf = jnp.pad(x.reshape(-1), (0, n_pad - n))
        L = 128
    else:
        xf = x.reshape(-1)
        n_pad = n
    rows = n_pad // L
    tr = _pick_row_tile(rows)
    x2 = xf.reshape(rows, L)
    out = pl.pallas_call(
        functools.partial(_act_kernel, act=act, slope=slope),
        out_shape=jax.ShapeDtypeStruct((rows, L), x.dtype),
        grid_spec=pltpu.PrefetchScalarGridSpec(
            num_scalar_prefetch=0, grid=(rows // tr,),
            in_specs=[pl.BlockSpec((tr, L), lambda i: (i, 0))],
            out_specs=pl.BlockSpec((tr, L), lambda i: (i, 0))),
        compiler_params=pltpu.CompilerParams(
            dimension_semantics=("parallel",)),
    )(x2)
    return out.reshape(-1)[:n].reshape(shp)


# ----------------------------------------------------------------- model construction
def build_params(architecture, key):
    params = []
    for l in architecture:
        t = l['type']
        if t == 'conv':
            key, k1, k2 = jax.random.split(key, 3)
            C, OC, ks = l['in_channels'], l['out_channels'], l['kernel_size']
            fan_in = C * ks * ks
            bound = 1.0 / float(fan_in) ** 0.5
            w = jax.random.uniform(k1, (OC, C, ks, ks), jnp.float32, -bound, bound)
            b = jax.random.uniform(k2, (OC,), jnp.float32, -bound, bound)
            # pre-reshape once to the (OC, C*KH*KW) matmul layout
            params.append({'wmat': w.reshape(OC, C * ks * ks), 'b': b})
        elif t == 'fc':
            key, k1, k2 = jax.random.split(key, 3)
            fin, fout = l['in_features'], l['out_features']
            bound = 1.0 / float(fin) ** 0.5
            w = jax.random.uniform(k1, (fout, fin), jnp.float32, -bound, bound)
            b = jax.random.uniform(k2, (fout,), jnp.float32, -bound, bound)
            # store pre-transposed (in, out) and lane-pad out_features to 128 so the
            # fc matmul output gets full, unmasked 128-lane stores.
            fout_p = _round_up(fout, 128)
            wt = jnp.pad(w.T, ((0, 0), (0, fout_p - fout)))
            bp = jnp.pad(b, (0, fout_p - fout))
            params.append({'wt': wt, 'b': bp, 'out_features': fout})
        elif t == 'batch_norm':
            params.append({'gamma': jnp.ones((l['conv_features'],), jnp.float32),
                           'beta': jnp.zeros((l['conv_features'],), jnp.float32)})
        else:
            params.append(None)
    return params


def custom_cnn_forward(x, architecture, params):
    # Internal activation layout: (C, N, H, W) -- NCHW <-> internal conversion is done
    # exactly once at entry and once at flatten.
    if x.ndim == 4:
        x = jnp.transpose(x, (1, 0, 2, 3))   # NCHW -> (C, N, H, W)

    n_layers = len(architecture)
    i = 0
    while i < n_layers:
        l = architecture[i]
        p = params[i]
        t = l['type']

        # Fuse an immediately-following relu / leaky_relu into this layer's epilogue
        # (removes one full HBM round trip of the activation).
        fuse_act, slope, skip = 'none', 0.0, 0
        if t in ('conv', 'fc', 'batch_norm') and i + 1 < n_layers:
            nxt = architecture[i + 1]
            if nxt['type'] == 'relu':
                fuse_act, skip = 'relu', 1
            elif nxt['type'] == 'leaky_relu':
                fuse_act, slope, skip = 'leaky_relu', nxt['slope'], 1

        if t == 'conv':
            x = conv2d_cnhw(x, p['wmat'], p['b'],
                            KH=l['kernel_size'], KW=l['kernel_size'],
                            stride=l['stride'], pad=l['padding'],
                            act=fuse_act, slope=slope)
        elif t == 'batch_norm':
            C, N, H, W = x.shape
            xcm = x.reshape(C, N * H * W)            # zero-copy in this layout
            xcm = batch_norm_train(xcm, p['gamma'], p['beta'],
                                   act=fuse_act, slope=slope)
            x = xcm.reshape(C, N, H, W)
        elif t == 'relu':
            x = elementwise_act(x, 'relu')
        elif t == 'leaky_relu':
            x = elementwise_act(x, 'leaky_relu', l['slope'])
        elif t == 'pool':
            assert l['kernel_size'] == 2 and l['stride'] == 2 and l['padding'] == 0
            x = maxpool2x2_cnhw(x)
        elif t == 'flatten':
            if x.ndim == 4:
                C, N, H, W = x.shape
                # one-time exit conversion back to PyTorch NCHW flatten order
                x = jnp.transpose(x, (1, 0, 2, 3)).reshape(N, C * H * W)
            else:
                x = x.reshape(x.shape[0], -1)
        elif t == 'dropout':
            # TODO(synk): training-mode dropout mask depends on PyTorch RNG (not
            # reproducible); inference (identity) semantics used here.
            pass
        elif t == 'fc':
            out = matmul_epilogue(x, p['wt'], p['b'], bias_axis='col',
                                  act=fuse_act, slope=slope)
            x = out[:, :p['out_features']]
        else:
            raise ValueError(f'Unsupported layer type: {t}')

        i += 1 + skip
    return x


if __name__ == "__main__":
    # Concrete small architecture exercising every supported layer type.
    architecture = [
        {'type': 'conv', 'in_channels': 4, 'out_channels': 8,
         'kernel_size': 3, 'stride': 1, 'padding': 1},
        {'type': 'batch_norm', 'conv_features': 8},
        {'type': 'relu'},
        {'type': 'pool', 'kernel_size': 2, 'stride': 2, 'padding': 0},
        {'type': 'conv', 'in_channels': 8, 'out_channels': 16,
         'kernel_size': 3, 'stride': 1, 'padding': 1},
        {'type': 'leaky_relu', 'slope': 0.1},
        {'type': 'flatten'},
        {'type': 'dropout', 'p': 0.5},
        {'type': 'fc', 'in_features': 16 * 8 * 8, 'out_features': 32},
    ]

    key = jax.random.PRNGKey(0)
    key, xk = jax.random.split(key)
    x = jax.random.normal(xk, (2, 4, 16, 16), jnp.float32)   # NCHW, like PyTorch

    params = build_params(architecture, key)
    out = custom_cnn_forward(x, architecture, params)
    out = jax.block_until_ready(out)
    assert out.shape == (2, 32) and out.dtype == jnp.float32
    print("KERNEL_OK")
</pallas_src>

<mosaic_0001>
module attributes {stable_mosaic.version = 11 : i64} {
  func.func @_mm_epilogue_kernel(%arg0: i32, %arg1: i32, %arg2: i32, %arg3: memref<8x40xf32, #tpu.memory_space<vmem>>, %arg4: memref<40x256xf32, #tpu.memory_space<vmem>>, %arg5: memref<8x1xf32, #tpu.memory_space<vmem>>, %arg6: memref<8x256xf32, #tpu.memory_space<vmem>>, %arg7: memref<8x256xf32, #tpu.memory_space<vmem>>) attributes {dimension_semantics = [#tpu.dimension_semantics<parallel>, #tpu.dimension_semantics<parallel>, #tpu.dimension_semantics<arbitrary>], iteration_bounds = array<i64: 1, 2, 1>, scalar_prefetch = 0 : i64, scratch_operands = 1 : i64, tpu.core_type = #tpu.core_type<tc>, window_params = [{transform_indices = @transform_0, window_bounds = array<i64: 8, 40>}, {transform_indices = @transform_1, window_bounds = array<i64: 40, 256>}, {transform_indices = @transform_2, window_bounds = array<i64: 8, 1>}, {transform_indices = @transform_3, window_bounds = array<i64: 8, 256>}]} {
    %c0_i32 = arith.constant 0 : i32
    %0 = arith.cmpi eq, %arg2, %c0_i32 : i32
    %1 = arith.extui %0 : i1 to i32
    %c0_i32_0 = arith.constant 0 : i32
    %2 = arith.cmpi ne, %1, %c0_i32_0 : i32
    scf.if %2 {
      %cst_10 = arith.constant 0.000000e+00 : f32
      %12 = vector.broadcast %cst_10 : f32 to vector<8x256xf32>
      %c0_11 = arith.constant 0 : index
      %c0_12 = arith.constant 0 : index
      %13 = vector.load %arg7[%c0_11, %c0_12] : memref<8x256xf32, #tpu.memory_space<vmem>>, vector<8x256xf32>
      tpu.vector_store %arg7[%c0_11, %c0_12], %12 {strides = array<i32>} : memref<8x256xf32, #tpu.memory_space<vmem>>, vector<8x256xf32>,
    } else {
    }
    %c0 = arith.constant 0 : index
    %c0_1 = arith.constant 0 : index
    %3 = vector.load %arg7[%c0, %c0_1] : memref<8x256xf32, #tpu.memory_space<vmem>>, vector<8x256xf32>
    %c0_2 = arith.constant 0 : index
    %c0_3 = arith.constant 0 : index
    %4 = vector.load %arg3[%c0_2, %c0_3] : memref<8x40xf32, #tpu.memory_space<vmem>>, vector<8x40xf32>
    %c0_4 = arith.constant 0 : index
    %c0_5 = arith.constant 0 : index
    %5 = vector.load %arg4[%c0_4, %c0_5] : memref<40x256xf32, #tpu.memory_space<vmem>>, vector<40x256xf32>
    %cst = arith.constant dense<0.000000e+00> : vector<8x256xf32>
    %6 = tpu.matmul %4, %5, %cst {dimension_numbers = #tpu.dot_dimension_numbers<[1], [0], [0], [1], [0, 0, 1, 1], [], []>} : vector<8x40xf32>, vector<40x256xf32>, vector<8x256xf32> -> vector<8x256xf32>
    %7 = arith.addf %3, %6 : vector<8x256xf32>
    %c0_6 = arith.constant 0 : index
    %c0_7 = arith.constant 0 : index
    %8 = vector.load %arg7[%c0_6, %c0_7] : memref<8x256xf32, #tpu.memory_space<vmem>>, vector<8x256xf32>
    tpu.vector_store %arg7[%c0_6, %c0_7], %7 {strides = array<i32>} : memref<8x256xf32, #tpu.memory_space<vmem>>, vector<8x256xf32>,
    %c0_i32_8 = arith.constant 0 : i32
    %9 = arith.cmpi eq, %arg2, %c0_i32_8 : i32
    %10 = arith.extui %9 : i1 to i32
    %c0_i32_9 = arith.constant 0 : i32
    %11 = arith.cmpi ne, %10, %c0_i32_9 : i32
    scf.if %11 {
      %c0_10 = arith.constant 0 : index
      %c0_11 = arith.constant 0 : index
      %12 = vector.load %arg7[%c0_10, %c0_11] : memref<8x256xf32, #tpu.memory_space<vmem>>, vector<8x256xf32>
      %c0_12 = arith.constant 0 : index
      %c0_13 = arith.constant 0 : index
      %13 = vector.load %arg5[%c0_12, %c0_13] : memref<8x1xf32, #tpu.memory_space<vmem>>, vector<8x1xf32>
      %14 = vector.broadcast %13 : vector<8x1xf32> to vector<8x256xf32>
      %15 = arith.addf %12, %14 : vector<8x256xf32>
      %c0_14 = arith.constant 0 : index
      %c0_15 = arith.constant 0 : index
      %16 = vector.load %arg6[%c0_14, %c0_15] : memref<8x256xf32, #tpu.memory_space<vmem>>, vector<8x256xf32>
      tpu.vector_store %arg6[%c0_14, %c0_15], %15 {strides = array<i32>} : memref<8x256xf32, #tpu.memory_space<vmem>>, vector<8x256xf32>,
    } else {
    }
    return
  }
  func.func @transform_0(%arg0: i32, %arg1: i32, %arg2: i32) -> (i32, i32) {
    %c0_i32 = arith.constant 0 : i32
    return %arg0, %arg2 : i32, i32
  }
  func.func @transform_1(%arg0: i32, %arg1: i32, %arg2: i32) -> (i32, i32) {
    %c0_i32 = arith.constant 0 : i32
    return %arg2, %arg1 : i32, i32
  }
  func.func @transform_2(%arg0: i32, %arg1: i32, %arg2: i32) -> (i32, i32) {
    %c0_i32 = arith.constant 0 : i32
    %c0_i32_0 = arith.constant 0 : i32
    return %arg0, %c0_i32 : i32, i32
  }
  func.func @transform_3(%arg0: i32, %arg1: i32, %arg2: i32) -> (i32, i32) {
    %c0_i32 = arith.constant 0 : i32
    return %arg0, %arg1 : i32, i32
  }
}

</mosaic_0001>

<bundles_post_ra>
// kernel: tpu_custom_call.1
= control target key start
LH: loop header
LB: loop body
LE: loop exit
PB: predicated region body
PF: predicated region fallthrough
CT: control target
= control target key end

     0   :  { %8 = vsyncpa [#allocation4], 0  ;;  %s875_s0 = inlined_call_operand.vmem [shape: f32[8,40], index: 0, kind: input, shape index: {}]   ;;  %s876_s1 = inlined_call_operand.hbm [shape: f32[40,512], index: 1, kind: input, shape index: {}]   ;;  %s877_s2 = inlined_call_operand.vmem [shape: f32[8,1], index: 2, kind: input, shape index: {}]   ;;  %s878_s3 = inlined_call_operand.hbm [shape: f32[8,512], index: 3, kind: output, shape index: {}]  }
   0x1   :  { %10 = vsyncpa [#allocation4 + $0x1], 0 }
   0x2   :  { %11 = vsyncpa [#allocation5], 0 }
   0x3   :  { %13 = vsyncpa [#allocation5 + $0x1], 0  ;;  %s738_s12 = smov 0   ;;  %s740_s13 = smov 0  }
   0x4   :  { %s742_s14 = smov 0   ;;  %s744_s15 = smov 0  }
   0x5   :  { %s746_s16 = smov 0   ;;  %s748_s17 = smov 0  }
   0x6 LB: > { %s513_s18 = sadd.s32 4294967295, %s709_s17   ;;  %s514_s19 = sadd.s32 4294967294, %s709_s17   ;;  %s709_s17 = sphi %s748_s17, %s19_s17   ;;  %s705_s16 = sphi %s746_s16, %s889_s16   ;;  %s701_s15 = sphi %s744_s15, %s888_s15   ;;  %s697_s14 = sphi %s742_s14, %s887_s14   ;;  %s693_s13 = sphi %s740_s13, %s886_s13   ;;  %s689_s12 = sphi %s738_s12, %s885_s12  }
   0x7   : > { %s34_s20 = sadd.s32 1, %s705_s16  ;;  %s75_s21 = sadd.s32 1, %s697_s14 }
   0x8   : > { %p36_p0 = scmp.ge.s32.totalorder %s34_s20, 2  ;;  %p82_p1 = scmp.ne.s32.totalorder %s697_s14, %s693_s13 }
   0x9   : > { %p83_p2 = scmp.eq.s32.totalorder %s709_s17, 0  ;;  %p88_p3 = scmp.ne.s32.totalorder %s693_s13, %s689_s12 }
   0xa   : > { %s891_s20 = smov (%p36_p0, %s34_s20), 0  ;;  %p89_p5 = scmp.eq.s32.totalorder %s513_s18, 0 }
   0xb   : > { %p779_p4 = por %p83_p2, %p82_p1  ;;  %s71_s23 = ssub.s32 %s705_s16, %s891_s20 }
   0xc   : > { %p140_p6 = scmp.eq.s32.totalorder %s513_s18, 1  ;;  %p73_p7 = scmp.eq.s32.totalorder %s71_s23, 0 }
   0xd   : > { %p785_p8 = por %p89_p5, %p88_p3  ;;  %p146_p10 = scmp.eq.s32.totalorder %s514_s19, 1 }
   0xe   : > { %p789_p9 = por %p140_p6, %p82_p1  ;;  %p545_p13 = scmp.lt.s32.totalorder %s709_s17, 2 }
   0xf   : > { %s794_s26 = scalar_select %p73_p7, %s697_s14, %s75_s21  }
  0x10   : > { %p796_p11 = por %p146_p10, %p88_p3  ;;  %s183_s28 = sand.u32 1, %s697_s14  }
  0x11   : > { %s531_s29 = smul.u32 80, %s183_s28  ;;  %s529_s30 = sshll.u32 %s705_s16, 8 }
  0x12   : > { %p806_p0 = pnand %p545_p13, %p779_p4  ;;  %s196_s7 = scalar_lea.hbm %s876_s1, %s529_s30 }
  0x13   : > { %s187_s8 = scalar_lea.vmem [#allocation3], %s531_s29  ;;  %s184_s10 = scalar_lea.sflag [#allocation4], %s183_s28 }
  0x14   : > { %s197_s9 = sshll.u32 %s187_s8, 4  ;;  %p603_p1 = pneg %p806_p0  ;;  %s198_s9 = int_to_ptr.vmem [resolvable:$true] %s197_s9 }
  0x15   : > { %s614_s11 = scalar_lea.vmem %s198_s9, 1280  ;;  %s711_s18 = smov [#allocation3]  }
  0x16   : > { %p615_p2 = scmp.ne.s32.totalorder %s198_s9, %s614_s11  ;;  %s619_s19 = sshll.u32 %s711_s18, 4  ;;  %s620_s19 = int_to_ptr.vmem [resolvable:$false] %s619_s19 }
  0x17   : > { %s621_s21 = scalar_lea.vmem %s620_s19, 2560  ;;  %p622_p4 = scmp.lt.s32.totalorder %s198_s9, %s620_s19 }
  0x18   : > { %p617_p3 = pnand %p615_p2, %p603_p1  ;;  %p623_p6 = scmp.lt.s32.totalorder %s621_s21, %s614_s11 }
  0x1a   : > { %p618_p5 = pneg %p617_p3  ;;  %p624_p7 = por %p623_p6, %p622_p4 }
  0x1c   : > { %p625_p10 = pnand %p624_p7, %p618_p5 }
  0x1e   : > { %628 = shalt.err (!%p625_p10)
}
  0x1f   : > { %s712_s22 = smov 512   ;;  %s713_s23 = smov 256  }
  0x20   : > { %s714_s28 = smov 16   ;;  %p521_p13 = scmp.ge.s32.totalorder %s709_s17, 1 }
  0x21   : > { %540 = dma.hbm_to_vmem [thread:$0]  (!%p806_p0), %s196_s7, 1280, %s198_s9, %s184_s10, %s712_s22, %s713_s23, %s714_s28  }
  0x22   : > { %p205_p1 = scmp.lt.s32.totalorder %s709_s17, 3 }
  0x24   : > { %p206_p2 = pnand %p521_p13, %p205_p1 }
  0x25   : > { %s820_s29 = sand.u32 (!%p206_p2), 1, %s693_s13  }
  0x26   : > { %209 = sbr.rel (%p206_p2) target bundleno = 266 (0x10a), region = 32  ;;  %s212_s5 = scalar_lea.sflag (!%p206_p2), [#allocation4], %s820_s29 }
  0x27   : > { %s532_s30 = smul.u32 (!%p206_p2), 80, %s820_s29 }
  0x29   : > { %s215_s6 = scalar_lea.vmem (!%p206_p2), [#allocation3], %s532_s30 }
  0x2b   : > { %680 = dma.done.wait (%p785_p8), %s212_s5, 1280  }
  0x2c   : > { %682 = vsyncadd (%p785_p8), %s212_s5, 4294966016  ;;  %v715_v0 = vmov 0.0   ;;  %v716_v1 = vmov 0   ;;  %v281_v2 = vld [vmem:[%s215_s6 + $0x48] sm:$0xff]  ;;  %v280_v3 = vld [vmem:[%s215_s6 + $0x40] sm:$0xff]  ;;  %vm282_vm0 = vcmask 326656  }
  0x2d   : > { %350 = vmatprep.mubr.f32.mxu0 %v715_v0  ;;  %600 = vset.pattern.permute.xlu0 %v716_v1  ;;  %v279_v4 = vld [vmem:[%s215_s6 + $0x38] sm:$0xff]  ;;  %v278_v5 = vld [vmem:[%s215_s6 + $0x30] sm:$0xff]  ;;  %v277_v6 = vld [vmem:[%s215_s6 + $0x28] sm:$0xff]  ;;  %s522_s9 = sshll.u32 %s820_s29, 4  ;;  %s530_s10 = sshll.u32 %s701_s15, 8 }
  0x2e   : > { %308 = vmatprep.subr.mxu0 %v281_v2  ;;  %v276_v7 = vld [vmem:[%s215_s6 + $0x20] sm:$0xff]  ;;  %v275_v9 = vld [vmem:[%s215_s6 + $0x18] sm:$0xff]  ;;  %v274_v10 = vld [vmem:[%s215_s6 + $0x10] sm:$0xff]  ;;  %s248_s11 = scalar_lea.vmem [#allocation6], %s522_s9  ;;  %s391_s22 = scalar_lea.hbm %s878_s3, %s530_s10 }
  0x2f   : > { %309 = vmatpush1.msra.mxu0 %v280_v3  ;;  %v366_v8 = vld [vmem:[%s877_s2] sm:$0xff]  ;;  %v273_v11 = vld [vmem:[%s215_s6 + $0x8] sm:$0xff]  ;;  %s393_s18 = sshll.u32 %s248_s11, 4  ;;  %s377_s23 = scalar_lea.sflag [#allocation5], %s820_s29  ;;  %s394_s18 = int_to_ptr.vmem [resolvable:$true] %s393_s18 }
  0x30   : > { %310 = vmatprep.subr.mxu0 %v279_v4  ;;  %369 = vperm.xlu0 %600, %v366_v8   ;;  %v272_v12 = vld [vmem:[%s215_s6] sm:$0xff]  ;;  %s629_s28 = scalar_lea.vmem %s394_s18, 256  ;;  %s717_s30 = smov [#allocation6]  }
  0x31   : > { %311 = vmatpush1.msra.mxu0 %v278_v5  ;;  %v271_v13 = vld [vmem:[%s875_s0] sm:$0xff]  ;;  %p630_p8 = scmp.ne.s32.totalorder %s394_s18, %s629_s28  ;;  %s633_s15 = sshll.u32 %s717_s30, 4  ;;  %s634_s15 = int_to_ptr.vmem [resolvable:$false] %s633_s15 }
  0x32   : > { %312 = vmatprep.subr.mxu0 %v277_v6  ;;  %s635_s5 = scalar_lea.vmem %s634_s15, 512  ;;  %p636_p5 = scmp.lt.s32.totalorder %s394_s18, %s634_s15 }
  0x33   : > { %313 = vmatpush1.msra.mxu0 %v276_v7  ;;  %p631_p0 = pnand %p630_p8, %p789_p9  ;;  %p637_p4 = scmp.lt.s32.totalorder %s635_s5, %s629_s28 }
  0x34   : > { %314 = vmatprep.subr.mxu0 %v275_v9 }
  0x35   : > { %315 = vmatpush1.msra.mxu0 %v274_v10  ;;  %p632_p3 = pneg %p631_p0  ;;  %p638_p6 = por %p637_p4, %p636_p5 }
  0x36   : > { %316 = vmatprep.subr.mxu0 %v273_v11 }
  0x37   : > { %317 = vmatpush1.msra.mxu0 %v272_v12  ;;  %p639_p7 = pnand %p638_p6, %p632_p3 }
  0x38   : > { %523 = vmatmul.mubr.msk.f32.vlgmr.msra.gmra.mxu0 %vm282_vm0, %v271_v13 }
  0xab   : > { %v370_v14 = vpop.permute.xlu0 %369 }
  0xf8   : > { %v352_v15 = vpop.f32.mrf.mxu0 }
  0xf9   : > { %v372_v16 = vadd.f32 %v370_v14, %v352_v15 }
  0xfa   : > { %v354_v17 = vpop.f32.mrf.mxu0 }
  0xfb   : > { %374 = vst [vmem:[%s248_s11] sm:$0xff] %v372_v16  ;;  %v373_v18 = vadd.f32 %v370_v14, %v354_v17 }
  0xfd   : > { %375 = vst [vmem:[%s248_s11 + $0x8] sm:$0xff] %v373_v18 }
  0xfe   : > { %642 = shalt.err (!%p639_p7)
}
  0xff   : > { %s643_s6 = scalar_lea.hbm %s391_s22, 256  ;;  %s647_s7 = scalar_lea.hbm %s878_s3, 512 }
 0x100   : > { %p644_p10 = scmp.ne.s32.totalorder %s391_s22, %s643_s6  ;;  %p648_p2 = scmp.lt.s32.totalorder %s391_s22, %s878_s3 }
 0x101   : > { %p649_p8 = scmp.lt.s32.totalorder %s647_s7, %s643_s6 }
 0x102   : > { %p645_p13 = pnand %p644_p10, %p789_p9 }
 0x103   : > { %p650_p0 = por %p649_p8, %p648_p2 }
 0x104   : > { %p646_p1 = pneg %p645_p13 }
 0x106   : > { %p651_p12 = pnand %p650_p0, %p646_p1 }
 0x108   : > { %654 = shalt.err (!%p651_p12)
}
 0x109   : > { %535 = dma.vmem_to_hbm [thread:$0]  (%p789_p9), %s394_s18, 256, %s391_s22, %s377_s23  }
 0x10a PF: > { %s405_s9 = sand.u32 1, %s689_s12   ;;  %p884_p3 = scmp.ge.s32.totalorder %s709_s17, 2 }
 0x10b   : > { %s406_s10 = scalar_lea.sflag [#allocation5], %s405_s9 }
 0x10c   : > { %p542_p5 = pnand %p884_p3, %p796_p11 }
 0x10e   : > { %p543_p4 = pneg %p542_p5 }
 0x110   : > { %684 = dma.done.wait (%p543_p4), %s406_s10, 256  }
 0x111   : > { %686 = vsyncadd (%p543_p4), %s406_s10, 4294967040  ;;  %s19_s17 = sadd.s32 1, %s709_s17   ;;  %s885_s12 = smov %s693_s13 }
 0x112   : > { %p16_p6 = scmp.ge.s32.totalorder %s19_s17, 4   ;;  %s886_s13 = smov %s697_s14 }
 0x113   : > { %s887_s14 = smov %s794_s26  ;;  %s888_s15 = smov %s705_s16 }
 0x114   : > { %s889_s16 = smov %s891_s20  ;;  %18 = sbr.rel (!%p16_p6) target bundleno = 6 (0x6), region = 91 }
 0x119   :  { %411 = vsyncpa [#allocation4], 1 }
 0x11a   :  { %413 = vsyncpa [#allocation4 + $0x1], 1 }
 0x11b   :  { %414 = vsyncpa [#allocation5], 1 }
 0x11c   :  { %416 = vsyncpa [#allocation5 + $0x1], 1 }

</bundles_post_ra>
